<compile_context>
chip_gen: v7x
topology: tpu7x:2x2x1
jax: 0.10.0
libtpu: 0.0.40
codegen_flags: <defaults>
</compile_context>

<pallas_src>
import math

import jax
import jax.numpy as jnp
from jax.experimental import pallas as pl
from jax.experimental.pallas import tpu as pltpu


# Below this many output bytes, a plain XLA broadcast_to beats a pallas_call.
_MIN_PALLAS_OUT_BYTES = 1 << 20


def _expand_kernel(x_ref, o_ref):
    # Pure copy/broadcast of the input tile across the output tile.
    # Broadcast dims of the input tile have extent 1; non-broadcast dims match.
    o_ref[...] = jnp.broadcast_to(x_ref[...], o_ref.shape)


def _sublane_multiple(itemsize: int) -> int:
    # Sub-32-bit dtypes pack along sublanes: (8,128) f32, (16,128) bf16,
    # (32,128) int8/fp8.
    if itemsize >= 4:
        return 8
    if itemsize == 2:
        return 16
    return 32


def _tpu_defaults():
    """(block_bytes, vmem_limit_cap) tuned per TPU generation."""
    kind = ""
    try:
        dev = jax.devices()[0]
        if dev.platform == "tpu":
            kind = dev.device_kind.lower()
    except Exception:  # pragma: no cover - fallback for odd environments
        pass
    # v5e: ~820 GB/s HBM, 16 MiB default scoped VMEM -> modest blocks, but we
    # also set vmem_limit_bytes explicitly so 2x(in+out) never hits the default.
    if "v5 lite" in kind or "v5e" in kind or "v5litepod" in kind:
        return 4 * 1024 * 1024, 112 << 20
    # v7x: 3.2 TB/s HBM but only 64 MiB physical VMEM -> 8 MiB blocks, capped.
    if "v7" in kind:
        return 8 * 1024 * 1024, 56 << 20
    # v6e: ~1.4 TB/s HBM, 128 MiB physical VMEM.
    if "v6" in kind:
        return 8 * 1024 * 1024, 112 << 20
    # Unknown / older generations: conservative.
    return 4 * 1024 * 1024, 64 << 20


def _pick_tile(dim: int, unit: int, max_elems: int) -> int:
    """Largest tile <= max_elems that is either the full extent of `dim` or a
    multiple of `unit`.  Prefers an exact divisor (no ragged edge) but only if
    that divisor is at least ~half the cap; otherwise takes the non-divisor
    cap and accepts one masked ragged-edge block (wide, mostly-unmasked DMA
    runs beat many tiny fully-aligned tiles for a store-bound kernel)."""
    if dim <= max_elems:
        return dim
    cap = max(unit, (max_elems // unit) * unit)
    lo = max(unit, ((cap // 2) // unit) * unit)
    k = cap
    while k >= lo:
        if dim % k == 0:
            return k
        k -= unit
    return cap


def expand(x: jax.Array, *size,
           min_pallas_bytes: int = _MIN_PALLAS_OUT_BYTES,
           block_bytes: int | None = None) -> jax.Array:
    """JAX/Pallas equivalent of ``torch.Tensor.expand(*size)``."""
    # Accept both expand(x, (a, b, c)) and expand(x, a, b, c)  (the PyTorch
    # module forwards the captured *size tuple).
    if len(size) == 1 and isinstance(size[0], (tuple, list)):
        size = tuple(size[0])
    size = tuple(int(s) for s in size)

    if len(size) < x.ndim:
        raise ValueError(
            f"expand: number of sizes ({len(size)}) must be >= tensor ndim ({x.ndim})")

    n_new = len(size) - x.ndim
    x_dims = (1,) * n_new + tuple(x.shape)

    out_shape = []
    for d, (s, xd) in enumerate(zip(size, x_dims)):
        if s == -1:
            if d < n_new:
                raise ValueError("expand: -1 is not allowed for a new leading dimension")
            out_shape.append(xd)
        else:
            if xd != 1 and s != xd:
                raise ValueError(f"expand: cannot expand dim {d} of size {xd} to size {s}")
            out_shape.append(s)
    out_shape = tuple(out_shape)

    x_aligned = x.reshape(x_dims)
    total = math.prod(out_shape) if out_shape else 1

    # Trivial / degenerate cases: no real expansion or empty tensors.
    if out_shape == x_dims or total == 0 or x.size == 0:
        return jnp.broadcast_to(x_aligned, out_shape)

    # ---- canonicalize the broadcast pattern -------------------------------
    # Drop output dims of size 1 (their input dim is necessarily 1 too), then
    # merge adjacent dims with identical broadcast status.  Keeps the trailing
    # dim as lane-dense as the pattern permits.
    dims = [(xd, od) for xd, od in zip(x_dims, out_shape) if od != 1]
    merged = []  # list of (in_dim, out_dim, is_broadcast)
    for xd, od in dims:
        bc = (xd == 1)
        if merged and merged[-1][2] == bc:
            pxd, pod, _ = merged[-1]
            merged[-1] = (1 if bc else pxd * xd, pod * od, bc)
        else:
            merged.append((xd, od, bc))

    if not merged:
        return jnp.broadcast_to(x_aligned, out_shape)

    itemsize = x.dtype.itemsize
    out_bytes = total * itemsize

    # Small outputs: launch + DMA setup dominates -> let XLA fuse the copy.
    if out_bytes < min_pallas_bytes:
        return jnp.broadcast_to(x_aligned, out_shape)

    # Sub-128-lane trailing dim => masked vst.msk partial stores & narrow DMA
    # segments: known-slow configuration, let XLA handle it instead.
    if merged[-1][1] < 128:
        return jnp.broadcast_to(x_aligned, out_shape)

    cin = [m[0] for m in merged]
    cout = [m[1] for m in merged]
    bcast = [m[2] for m in merged]

    # Pallas wants >= 2 dims (last two obey the (sublane, 128) rules).
    while len(cout) < 2:
        cin.insert(0, 1)
        cout.insert(0, 1)
        bcast.insert(0, False)

    r = len(cout)
    sub = _sublane_multiple(itemsize)
    default_block_bytes, vmem_cap = _tpu_defaults()
    blk_bytes = int(block_bytes) if block_bytes is not None else default_block_bytes

    # ---- tile the last (up to) three canonical dims, ~blk_bytes per block ----
    W = cout[-1]
    tw = _pick_tile(W, 128, max(128, blk_bytes // (sub * itemsize)))
    H = cout[-2]
    th = _pick_tile(H, sub, max(sub, blk_bytes // (tw * itemsize)))
    tiles = [th, tw]
    if r >= 3:
        D3 = cout[-3]
        t3 = _pick_tile(D3, 1, max(1, blk_bytes // (tw * th * itemsize)))
        tiles = [t3, th, tw]
    n_tiled = len(tiles)
    n_lead = r - n_tiled

    # Per-canonical-dim block shape and block count.
    out_block = [1] * n_lead + tiles
    in_block = [1 if bcast[d] else out_block[d] for d in range(r)]
    nblk = [pl.cdiv(cout[d], out_block[d]) for d in range(r)]

    # ---- grid: non-broadcast axes outer ("parallel"), broadcast axes innermost
    # ("arbitrary").  Broadcast axes map to input block index 0, so with them
    # innermost the input block index is unchanged across consecutive steps and
    # Pallas elides the input re-DMA (input stays VMEM-resident).
    grid_order = tuple(d for d in range(r) if not bcast[d]) + \
                 tuple(d for d in range(r) if bcast[d])
    pos = [0] * r
    for g, d in enumerate(grid_order):
        pos[d] = g
    pos = tuple(pos)
    bcast_t = tuple(bcast)

    grid = tuple(nblk[d] for d in grid_order)
    dim_semantics = tuple("arbitrary" if bcast_t[d] else "parallel" for d in grid_order)

    def out_index_map(*gidx):
        return tuple(gidx[pos[d]] for d in range(r))

    def in_index_map(*gidx):
        return tuple(0 if bcast_t[d] else gidx[pos[d]] for d in range(r))

    # Explicit scoped-VMEM budget: 2 pipeline buffers x (in + out block) + 25%
    # margin, floored at 32 MiB and capped per generation.
    in_block_bytes = math.prod(in_block) * itemsize
    out_block_bytes = math.prod(out_block) * itemsize
    vmem_limit = max(32 << 20, int(2 * (in_block_bytes + out_block_bytes) * 1.25))
    vmem_limit = min(vmem_limit, vmem_cap)

    cost = pl.CostEstimate(
        flops=0, transcendentals=0,
        bytes_accessed=x.size * itemsize + out_bytes)

    x_c = x_aligned.reshape(tuple(cin))

    out_c = pl.pallas_call(
        _expand_kernel,
        out_shape=jax.ShapeDtypeStruct(tuple(cout), x.dtype),
        grid=grid,
        in_specs=[pl.BlockSpec(tuple(in_block), in_index_map)],
        out_specs=pl.BlockSpec(tuple(out_block), out_index_map),
        compiler_params=pltpu.CompilerParams(
            dimension_semantics=dim_semantics,
            vmem_limit_bytes=vmem_limit),
        cost_estimate=cost,
    )(x_c)

    return out_c.reshape(out_shape)


class Expand:
    """JAX/Pallas equivalent of the PyTorch Expand module."""

    def __call__(self, x, *size):
        return expand(x, *size)


if __name__ == "__main__":
    key = jax.random.PRNGKey(0)
    k1, k2, k3, k4 = jax.random.split(key, 4)
    module = Expand()

    # 1) Classic broadcast along a size-1 channel dim (small; force Pallas path).
    x1 = jax.random.normal(k1, (2, 1, 16, 16), dtype=jnp.float32)
    y1 = jax.block_until_ready(expand(x1, 2, 4, 16, 16, min_pallas_bytes=0))
    ref1 = jnp.broadcast_to(x1, (2, 4, 16, 16))
    assert y1.shape == (2, 4, 16, 16) and y1.dtype == x1.dtype
    assert jnp.array_equal(y1, ref1)

    # 2) New leading dim + "-1" (keep) semantics, alternating broadcast pattern
    #    (forces Pallas; exercises the broadcast-innermost grid reorder).
    x2 = jax.random.normal(k2, (4, 1, 128), dtype=jnp.float32)
    y2 = jax.block_until_ready(expand(x2, 2, -1, 8, 128, min_pallas_bytes=0))
    ref2 = jnp.broadcast_to(x2.reshape(1, 4, 1, 128), (2, 4, 8, 128))
    assert y2.shape == (2, 4, 8, 128) and jnp.array_equal(y2, ref2)

    # 3) Medium, lane-dense bf16 case that takes the Pallas path by default.
    x3 = jax.random.normal(k3, (8, 1, 256), dtype=jnp.bfloat16)
    y3 = jax.block_until_ready(module(x3, 8, 512, 256))
    ref3 = jnp.broadcast_to(x3, (8, 512, 256))
    assert y3.shape == (8, 512, 256) and y3.dtype == jnp.bfloat16
    assert jnp.array_equal(y3, ref3)

    # 4) No-op expand (all -1): trivial path, returns the same values.
    y4 = jax.block_until_ready(module(x1, -1, -1, -1, -1))
    assert y4.shape == x1.shape and jnp.array_equal(y4, x1)

    # 5) Leading-dim expand spanning several grid steps (small forced block so
    #    the broadcast-innermost / input-DMA-elision path is actually exercised).
    x5 = jax.random.normal(k4, (1, 8, 1024), dtype=jnp.float32)
    y5 = jax.block_until_ready(
        expand(x5, 32, 8, 1024, min_pallas_bytes=0, block_bytes=64 * 1024))
    ref5 = jnp.broadcast_to(x5, (32, 8, 1024))
    assert y5.shape == (32, 8, 1024) and jnp.array_equal(y5, ref5)

    print("KERNEL_OK")
</pallas_src>

<mosaic_0001>
module attributes {stable_mosaic.version = 11 : i64} {
  func.func @_expand_kernel(%arg0: i32, %arg1: i32, %arg2: i32, %arg3: memref<2x1x256xf32, #tpu.memory_space<vmem>>, %arg4: memref<2x4x256xf32, #tpu.memory_space<vmem>>) attributes {dimension_semantics = [#tpu.dimension_semantics<parallel>, #tpu.dimension_semantics<parallel>, #tpu.dimension_semantics<arbitrary>], iteration_bounds = array<i64: 1, 1, 1>, scalar_prefetch = 0 : i64, scratch_operands = 0 : i64, tpu.core_type = #tpu.core_type<tc>, window_params = [{transform_indices = @transform_0, window_bounds = array<i64: 2, 1, 256>}, {transform_indices = @transform_1, window_bounds = array<i64: 2, 4, 256>}]} {
    %c0 = arith.constant 0 : index
    %c0_0 = arith.constant 0 : index
    %c0_1 = arith.constant 0 : index
    %0 = vector.load %arg3[%c0, %c0_0, %c0_1] : memref<2x1x256xf32, #tpu.memory_space<vmem>>, vector<2x1x256xf32>
    %1 = vector.shape_cast %0 : vector<2x1x256xf32> to vector<2x1x256xf32>
    %2 = vector.broadcast %1 : vector<2x1x256xf32> to vector<2x4x256xf32>
    %c0_2 = arith.constant 0 : index
    %c0_3 = arith.constant 0 : index
    %c0_4 = arith.constant 0 : index
    %3 = vector.load %arg4[%c0_2, %c0_3, %c0_4] : memref<2x4x256xf32, #tpu.memory_space<vmem>>, vector<2x4x256xf32>
    tpu.vector_store %arg4[%c0_2, %c0_3, %c0_4], %2 {strides = array<i32>} : memref<2x4x256xf32, #tpu.memory_space<vmem>>, vector<2x4x256xf32>,
    return
  }
  func.func @transform_0(%arg0: i32, %arg1: i32, %arg2: i32) -> (i32, i32, i32) {
    %c0_i32 = arith.constant 0 : i32
    %c0_i32_0 = arith.constant 0 : i32
    return %arg0, %c0_i32, %arg1 : i32, i32, i32
  }
  func.func @transform_1(%arg0: i32, %arg1: i32, %arg2: i32) -> (i32, i32, i32) {
    %c0_i32 = arith.constant 0 : i32
    return %arg0, %arg2, %arg1 : i32, i32, i32
  }
}

</mosaic_0001>

<bundles_post_ra>
// kernel: tpu_custom_call.1
= control target key start
LH: loop header
LB: loop body
LE: loop exit
PB: predicated region body
PF: predicated region fallthrough
CT: control target
= control target key end

     0   :  { %6 = vsyncpa [#allocation3], 0  ;;  %s160_s0 = inlined_call_operand.hbm [shape: f32[2,1,256], index: 0, kind: input, shape index: {}]   ;;  %s161_s1 = inlined_call_operand.hbm [shape: f32[2,4,256], index: 1, kind: output, shape index: {}]  }
   0x1   :  { %7 = vsyncpa [#allocation4], 0  ;;  %s120_s6 = smov [#allocation2]   ;;  %s72_s10 = scalar_lea.hbm %s160_s0, 64 }
   0x2   :  { %s13_s7 = sshll.u32 %s120_s6, 4  ;;  %p73_p0 = scmp.ne.s32.totalorder %s160_s0, %s72_s10  ;;  %s14_s7 = int_to_ptr.vmem [resolvable:$true] %s13_s7 }
   0x3   :  { %p76_p1 = scmp.lt.u32.totalorder %s72_s10, %s160_s0 }
   0x5   :  { %p78_p2 = pnand %p76_p1, %p73_p0 }
   0x7   :  { %81 = shalt.err (!%p78_p2)
}
   0x8   :  { %s82_s15 = scalar_lea.vmem %s14_s7, 64  ;;  %p87_p4 = scmp.lt.s32.totalorder %s14_s7, %s14_s7 }
   0x9   :  { %p83_p3 = scmp.ne.s32.totalorder %s14_s7, %s82_s15  ;;  %p88_p5 = scmp.lt.s32.totalorder %s82_s15, %s82_s15 }
   0xb   :  { %p89_p6 = por %p88_p5, %p87_p4 }
   0xd   :  { %p90_p7 = pnand %p89_p6, %p83_p3 }
   0xf   :  { %93 = shalt.err (!%p90_p7)
}
  0x10   :  { %s121_s16 = smov 32   ;;  %s122_s17 = smov 2  }
  0x11   :  { %19 = dma.hbm_to_vmem [thread:$0]  %s160_s0, 64, %s14_s7, [#allocation3], %s121_s16, %s121_s16, %s122_s17  }
  0x12   :  { %116 = dma.done.wait [#allocation3], 64  }
  0x13   :  { %117 = vsyncadd [#allocation3], 4294967232  ;;  %v27_v0 = vlaneseq  ;;  %v23_v4 = vld [vmem:[#allocation2] sm:$0x3]  ;;  %v24_v5 = vld [vmem:[#allocation2 + $0x2] sm:$0x3] }
  0x14   :  { %s123_s20 = smov [#allocation5]  }
  0x15   :  { %v28_v1 = vshrl.u32 %v27_v0, 7  ;;  %s54_s21 = sshll.u32 %s123_s20, 4  ;;  %s55_s21 = int_to_ptr.vmem [resolvable:$true] %s54_s21 }
  0x16   :  { %s94_s0 = scalar_lea.vmem %s55_s21, 256  ;;  %p99_p9 = scmp.lt.s32.totalorder %s55_s21, %s55_s21 }
  0x17   :  { %v29_v2 = vsub.s32 0, %v28_v1  ;;  %v33_v3 = vsub.s32 1, %v28_v1  ;;  %p95_p8 = scmp.ne.s32.totalorder %s55_s21, %s94_s0  ;;  %p100_p10 = scmp.lt.s32.totalorder %s94_s0, %s94_s0 }
  0x19   :  { %v30_v6 = vrot.slane %v23_v4, %v29_v2  ;;  %v34_v7 = vrot.slane %v23_v4, %v33_v3  ;;  %v38_v8 = vrot.slane %v24_v5, %v29_v2  ;;  %v42_v9 = vrot.slane %v24_v5, %v33_v3  ;;  %p101_p11 = por %p100_p10, %p99_p9 }
  0x1b   :  { %v43_v10 = vcombine.low %v30_v6, %v34_v7  ;;  %v44_v11 = vcombine.low %v38_v8, %v42_v9  ;;  %p102_p12 = pnand %p101_p11, %p95_p8 }
  0x1d   :  { %47 = vst [vmem:[#allocation5] sm:$0xff] %v43_v10  ;;  %48 = vst [vmem:[#allocation5 + $0x8] sm:$0xff] %v44_v11 }
  0x1e   :  { %105 = shalt.err (!%p102_p12)
}
  0x1f   :  { %s106_s24 = scalar_lea.hbm %s161_s1, 256 }
  0x20   :  { %p107_p13 = scmp.ne.s32.totalorder %s161_s1, %s106_s24  ;;  %p110_p0 = scmp.lt.u32.totalorder %s106_s24, %s161_s1 }
  0x22   :  { %p112_p1 = pnand %p110_p0, %p107_p13 }
  0x24   :  { %115 = shalt.err (!%p112_p1)
}
  0x25   :  { %s124_s29 = smov 128   ;;  %s125_s30 = smov 8  }
  0x26   :  { %60 = dma.vmem_to_hbm [thread:$0]  %s55_s21, 256, %s161_s1, [#allocation4], %s124_s29, %s124_s29, %s125_s30  }
  0x27   :  { %118 = dma.done.wait [#allocation4], 256  }
  0x28   :  { %119 = vsyncadd [#allocation4], 4294967040 }
  0x29   :  { %64 = vsyncpa [#allocation3], 1 }
  0x2a   :  { %65 = vsyncpa [#allocation4], 1 }

</bundles_post_ra>
